<compile_context>
chip_gen: v7x
topology: tpu7x:2x2x1
jax: 0.10.0
libtpu: 0.0.40
codegen_flags: <defaults>
</compile_context>

<pallas_src>
import jax
import jax.numpy as jnp
from jax.experimental import pallas as pl
from jax.experimental.pallas import tpu as pltpu


# ----------------------------------------------------------------------------
# Pallas kernel
# ----------------------------------------------------------------------------
def sage_kernel(a_ref, xk_ref, xi_ref, invdeg_ref, wl_ref, wr_ref, bl_ref,
                wfc_ref, bfc_ref, o_ref, acc_ref):
    k = pl.program_id(1)

    @pl.when(k == 0)
    def _init():
        acc_ref[...] = jnp.zeros_like(acc_ref)

    # --- O(N^2 * F) neighbor-sum: bf16 operands on the MXU, f32 accumulate ---
    acc_ref[...] += jnp.dot(
        a_ref[...], xk_ref[...].astype(jnp.bfloat16),
        preferred_element_type=jnp.float32)

    @pl.when(k == pl.num_programs(1) - 1)
    def _finalize():
        # mean aggregation: scale the accumulated neighbor sum by 1/deg
        agg = acc_ref[...] * invdeg_ref[...]                       # [tm, F]
        x_i = xi_ref[...]                                          # [tm, F]

        # SAGEConv(aggr='mean'): lin_l(mean_j x_j) + lin_r(x_i)
        h = jnp.dot(agg, wl_ref[...], preferred_element_type=jnp.float32)
        h = h + jnp.dot(x_i, wr_ref[...], preferred_element_type=jnp.float32)
        h = h + bl_ref[...]                                        # lin_l bias

        # normalize=True: F.normalize(h, p=2, dim=-1, eps=1e-12) via EUP rsqrt
        sumsq = jnp.sum(h * h, axis=-1, keepdims=True)
        h = h * jax.lax.rsqrt(jnp.maximum(sumsq, 1e-24))

        # transition: ReLU -> BatchNorm1d (folded into fc) -> Dropout (eval=id)
        h = jnp.maximum(h, 0.0)

        # fc (with BN folded in), output padded to a lane-dense width
        out = jnp.dot(h, wfc_ref[...], preferred_element_type=jnp.float32)
        o_ref[...] = (out + bfc_ref[...]).astype(o_ref.dtype)


# ----------------------------------------------------------------------------
# Wrapper
# ----------------------------------------------------------------------------
def _round_up(v, m):
    return ((v + m - 1) // m) * m


def _vmem_limit_bytes(tm, tk, nfeat, nhid, c_pad):
    per_buf = (tm * tk * 2                      # A tile (bf16)
               + tk * nfeat * 4                 # x_k tile
               + tm * nfeat * 4                 # x_i tile
               + tm * 4                         # inv_deg tile
               + 2 * nfeat * nhid * 4 + nhid * 4
               + nhid * c_pad * 4 + c_pad * 4
               + tm * c_pad * 4)                # output tile
    total = 2 * per_buf + tm * nfeat * 4 + (8 << 20)   # double-buffer + scratch + slack
    return int(min(max(total, 32 << 20), 64 << 20))    # stay within v7x's 64 MiB


def sage_forward(edge_index, x, params):
    """Full SAGE forward. edge_index: [2, E] int32 (row0=src, row1=dst), x: [N, F]."""
    n_nodes, nfeat = x.shape
    nhid = params["w_l"].shape[1]
    nclass = params["w_fc"].shape[1]

    # --- tile sizes / padding (sized against v7x's 64 MiB VMEM) ------------
    if n_nodes <= 512:
        n_pad = _round_up(max(n_nodes, 8), 128)
        tm = tk = n_pad
    else:
        tm = tk = 512
        n_pad = _round_up(n_nodes, 512)
    c_pad = _round_up(nclass, 128)              # lane-dense output

    # --- glue: adjacency counts (bf16-exact) + per-row inverse degree -------
    src = edge_index[0]
    dst = edge_index[1]
    adj = jnp.zeros((n_pad, n_pad), jnp.float32).at[dst, src].add(1.0)
    deg = jnp.sum(adj, axis=1, keepdims=True)
    inv_deg = 1.0 / jnp.maximum(deg, 1.0)       # isolated nodes aggregate to 0
    adj_bf16 = adj.astype(jnp.bfloat16)

    x_pad = jnp.zeros((n_pad, nfeat), jnp.float32).at[:n_nodes].set(x)

    # --- fold eval-mode BatchNorm affine into fc; pad fc to lane-dense ------
    w_fc_folded = params["bn_scale"].reshape(nhid, 1) * params["w_fc"]
    b_fc_folded = params["bn_shift"] @ params["w_fc"] + params["b_fc"]   # [1, nclass]
    w_fc_pad = jnp.zeros((nhid, c_pad), jnp.float32).at[:, :nclass].set(w_fc_folded)
    b_fc_pad = jnp.zeros((1, c_pad), jnp.float32).at[:, :nclass].set(b_fc_folded)

    grid = (n_pad // tm, n_pad // tk)

    cost = pl.CostEstimate(
        flops=2 * n_pad * n_pad * nfeat
              + 2 * n_pad * nfeat * nhid * 2
              + 2 * n_pad * nhid * c_pad,
        transcendentals=n_pad,
        bytes_accessed=n_pad * n_pad * 2
                       + 2 * n_pad * nfeat * 4
                       + n_pad * c_pad * 4
                       + (2 * nfeat * nhid + nhid * c_pad) * 4,
    )

    fn = pl.pallas_call(
        sage_kernel,
        out_shape=jax.ShapeDtypeStruct((n_pad, c_pad), jnp.float32),
        grid_spec=pltpu.PrefetchScalarGridSpec(
            num_scalar_prefetch=0,
            grid=grid,
            in_specs=[
                pl.BlockSpec((tm, tk), lambda i, k: (i, k)),        # A (bf16)
                pl.BlockSpec((tk, nfeat), lambda i, k: (k, 0)),     # x (neighbor rows)
                pl.BlockSpec((tm, nfeat), lambda i, k: (i, 0)),     # x (root rows)
                pl.BlockSpec((tm, 1), lambda i, k: (i, 0)),         # inv_deg
                pl.BlockSpec((nfeat, nhid), lambda i, k: (0, 0)),   # W_l
                pl.BlockSpec((nfeat, nhid), lambda i, k: (0, 0)),   # W_r
                pl.BlockSpec((1, nhid), lambda i, k: (0, 0)),       # b_l
                pl.BlockSpec((nhid, c_pad), lambda i, k: (0, 0)),   # W_fc (BN folded)
                pl.BlockSpec((1, c_pad), lambda i, k: (0, 0)),      # b_fc (BN folded)
            ],
            out_specs=pl.BlockSpec((tm, c_pad), lambda i, k: (i, 0)),
            scratch_shapes=[pltpu.VMEM((tm, nfeat), jnp.float32)],
        ),
        compiler_params=pltpu.CompilerParams(
            dimension_semantics=("parallel", "arbitrary"),
            vmem_limit_bytes=_vmem_limit_bytes(tm, tk, nfeat, nhid, c_pad),
        ),
        cost_estimate=cost,
    )
    out_pad = fn(
        adj_bf16, x_pad, x_pad, inv_deg,
        params["w_l"], params["w_r"], params["b_l"],
        w_fc_pad, b_fc_pad,
    )
    return out_pad[:n_nodes, :nclass]


# ----------------------------------------------------------------------------
# Deterministic parameter construction (mirrors the module's __init__).
# ----------------------------------------------------------------------------
def xavier_uniform(key, fan_in, fan_out):
    bound = jnp.sqrt(6.0 / (fan_in + fan_out))
    # stored as [in, out] (transposed vs torch [out, in])
    return jax.random.uniform(key, (fan_in, fan_out), jnp.float32, -bound, bound)


def init_params(key, nfeat, nhid, nclass):
    k1, k2, k3 = jax.random.split(key, 3)
    # SAGEConv: lin_l (with bias) on aggregated neighbors, lin_r (no bias) on root.
    w_l = xavier_uniform(k1, nfeat, nhid)
    w_r = xavier_uniform(k2, nfeat, nhid)
    b_l = jnp.zeros((1, nhid), jnp.float32)
    # BatchNorm1d(nhid), eval mode, fresh module: gamma=1, beta=0, mean=0, var=1.
    eps = 1e-5
    gamma = jnp.ones((1, nhid), jnp.float32)
    beta = jnp.zeros((1, nhid), jnp.float32)
    running_mean = jnp.zeros((1, nhid), jnp.float32)
    running_var = jnp.ones((1, nhid), jnp.float32)
    bn_scale = gamma / jnp.sqrt(running_var + eps)
    bn_shift = beta - running_mean * bn_scale
    # fc: Linear(nhid, nclass), xavier weights, zero bias.
    w_fc = xavier_uniform(k3, nhid, nclass)
    b_fc = jnp.zeros((1, nclass), jnp.float32)
    return dict(w_l=w_l, w_r=w_r, b_l=b_l,
                bn_scale=bn_scale, bn_shift=bn_shift,
                w_fc=w_fc, b_fc=b_fc)


if __name__ == "__main__":
    nfeat, nhid, nclass = 16, 32, 4
    n_nodes, n_edges = 8, 24

    key = jax.random.PRNGKey(0)
    k_x, k_src, k_dst, k_params = jax.random.split(key, 4)

    x = jax.random.normal(k_x, (n_nodes, nfeat), jnp.float32)
    src = jax.random.randint(k_src, (n_edges,), 0, n_nodes, jnp.int32)
    dst = jax.random.randint(k_dst, (n_edges,), 0, n_nodes, jnp.int32)
    edge_index = jnp.stack([src, dst], axis=0)          # [2, E]

    params = init_params(k_params, nfeat, nhid, nclass)

    out = sage_forward(edge_index, x, params)
    jax.block_until_ready(out)
    assert out.shape == (n_nodes, nclass)
    print("KERNEL_OK")
</pallas_src>

<mosaic_0001>
module attributes {stable_mosaic.version = 11 : i64} {
  func.func @sage_kernel(%arg0: i32, %arg1: i32, %arg2: memref<128x128xbf16, #tpu.memory_space<vmem>>, %arg3: memref<128x16xf32, #tpu.memory_space<vmem>>, %arg4: memref<128x16xf32, #tpu.memory_space<vmem>>, %arg5: memref<128x1xf32, #tpu.memory_space<vmem>>, %arg6: memref<16x32xf32, #tpu.memory_space<vmem>>, %arg7: memref<16x32xf32, #tpu.memory_space<vmem>>, %arg8: memref<1x32xf32, #tpu.memory_space<vmem>>, %arg9: memref<32x128xf32, #tpu.memory_space<vmem>>, %arg10: memref<1x128xf32, #tpu.memory_space<vmem>>, %arg11: memref<128x128xf32, #tpu.memory_space<vmem>>, %arg12: memref<128x16xf32, #tpu.memory_space<vmem>>) attributes {dimension_semantics = [#tpu.dimension_semantics<parallel>, #tpu.dimension_semantics<arbitrary>], iteration_bounds = array<i64: 1, 1>, scalar_prefetch = 0 : i64, scratch_operands = 1 : i64, tpu.core_type = #tpu.core_type<tc>, window_params = [{transform_indices = @transform_0, window_bounds = array<i64: 128, 128>}, {transform_indices = @transform_1, window_bounds = array<i64: 128, 16>}, {transform_indices = @transform_2, window_bounds = array<i64: 128, 16>}, {transform_indices = @transform_3, window_bounds = array<i64: 128, 1>}, {pipeline_mode = #tpu.pipeline_mode<synchronous>, transform_indices = @transform_4, window_bounds = array<i64: 16, 32>}, {pipeline_mode = #tpu.pipeline_mode<synchronous>, transform_indices = @transform_5, window_bounds = array<i64: 16, 32>}, {pipeline_mode = #tpu.pipeline_mode<synchronous>, transform_indices = @transform_6, window_bounds = array<i64: 1, 32>}, {pipeline_mode = #tpu.pipeline_mode<synchronous>, transform_indices = @transform_7, window_bounds = array<i64: 32, 128>}, {pipeline_mode = #tpu.pipeline_mode<synchronous>, transform_indices = @transform_8, window_bounds = array<i64: 1, 128>}, {transform_indices = @transform_9, window_bounds = array<i64: 128, 128>}]} {
    %c0_i32 = arith.constant 0 : i32
    %0 = arith.cmpi eq, %arg1, %c0_i32 : i32
    %1 = arith.extui %0 : i1 to i32
    %c0_i32_0 = arith.constant 0 : i32
    %2 = arith.cmpi ne, %1, %c0_i32_0 : i32
    scf.if %2 {
      %cst_10 = arith.constant 0.000000e+00 : f32
      %13 = vector.broadcast %cst_10 : f32 to vector<128x16xf32>
      %c0_11 = arith.constant 0 : index
      %c0_12 = arith.constant 0 : index
      %14 = vector.load %arg12[%c0_11, %c0_12] : memref<128x16xf32, #tpu.memory_space<vmem>>, vector<128x16xf32>
      tpu.vector_store %arg12[%c0_11, %c0_12], %13 {strides = array<i32>} : memref<128x16xf32, #tpu.memory_space<vmem>>, vector<128x16xf32>,
    } else {
    }
    %c0 = arith.constant 0 : index
    %c0_1 = arith.constant 0 : index
    %3 = vector.load %arg12[%c0, %c0_1] : memref<128x16xf32, #tpu.memory_space<vmem>>, vector<128x16xf32>
    %c0_2 = arith.constant 0 : index
    %c0_3 = arith.constant 0 : index
    %4 = vector.load %arg2[%c0_2, %c0_3] : memref<128x128xbf16, #tpu.memory_space<vmem>>, vector<128x128xbf16>
    %c0_4 = arith.constant 0 : index
    %c0_5 = arith.constant 0 : index
    %5 = vector.load %arg3[%c0_4, %c0_5] : memref<128x16xf32, #tpu.memory_space<vmem>>, vector<128x16xf32>
    %6 = arith.truncf %5 : vector<128x16xf32> to vector<128x16xbf16>
    %cst = arith.constant dense<0.000000e+00> : vector<128x16xf32>
    %7 = tpu.matmul %4, %6, %cst {dimension_numbers = #tpu.dot_dimension_numbers<[1], [0], [0], [1], [0, 0, 1, 1], [], []>} : vector<128x128xbf16>, vector<128x16xbf16>, vector<128x16xf32> -> vector<128x16xf32>
    %8 = arith.addf %3, %7 : vector<128x16xf32>
    %c0_6 = arith.constant 0 : index
    %c0_7 = arith.constant 0 : index
    %9 = vector.load %arg12[%c0_6, %c0_7] : memref<128x16xf32, #tpu.memory_space<vmem>>, vector<128x16xf32>
    tpu.vector_store %arg12[%c0_6, %c0_7], %8 {strides = array<i32>} : memref<128x16xf32, #tpu.memory_space<vmem>>, vector<128x16xf32>,
    %c0_i32_8 = arith.constant 0 : i32
    %10 = arith.cmpi eq, %arg1, %c0_i32_8 : i32
    %11 = arith.extui %10 : i1 to i32
    %c0_i32_9 = arith.constant 0 : i32
    %12 = arith.cmpi ne, %11, %c0_i32_9 : i32
    scf.if %12 {
      %c0_10 = arith.constant 0 : index
      %c0_11 = arith.constant 0 : index
      %13 = vector.load %arg12[%c0_10, %c0_11] : memref<128x16xf32, #tpu.memory_space<vmem>>, vector<128x16xf32>
      %c0_12 = arith.constant 0 : index
      %c0_13 = arith.constant 0 : index
      %14 = vector.load %arg5[%c0_12, %c0_13] : memref<128x1xf32, #tpu.memory_space<vmem>>, vector<128x1xf32>
      %15 = vector.broadcast %14 : vector<128x1xf32> to vector<128x16xf32>
      %16 = arith.mulf %13, %15 : vector<128x16xf32>
      %c0_14 = arith.constant 0 : index
      %c0_15 = arith.constant 0 : index
      %17 = vector.load %arg4[%c0_14, %c0_15] : memref<128x16xf32, #tpu.memory_space<vmem>>, vector<128x16xf32>
      %c0_16 = arith.constant 0 : index
      %c0_17 = arith.constant 0 : index
      %18 = vector.load %arg6[%c0_16, %c0_17] : memref<16x32xf32, #tpu.memory_space<vmem>>, vector<16x32xf32>
      %cst_18 = arith.constant dense<0.000000e+00> : vector<128x32xf32>
      %19 = tpu.matmul %16, %18, %cst_18 {dimension_numbers = #tpu.dot_dimension_numbers<[1], [0], [0], [1], [0, 0, 1, 1], [], []>} : vector<128x16xf32>, vector<16x32xf32>, vector<128x32xf32> -> vector<128x32xf32>
      %c0_19 = arith.constant 0 : index
      %c0_20 = arith.constant 0 : index
      %20 = vector.load %arg7[%c0_19, %c0_20] : memref<16x32xf32, #tpu.memory_space<vmem>>, vector<16x32xf32>
      %cst_21 = arith.constant dense<0.000000e+00> : vector<128x32xf32>
      %21 = tpu.matmul %17, %20, %cst_21 {dimension_numbers = #tpu.dot_dimension_numbers<[1], [0], [0], [1], [0, 0, 1, 1], [], []>} : vector<128x16xf32>, vector<16x32xf32>, vector<128x32xf32> -> vector<128x32xf32>
      %22 = arith.addf %19, %21 : vector<128x32xf32>
      %c0_22 = arith.constant 0 : index
      %c0_23 = arith.constant 0 : index
      %23 = vector.load %arg8[%c0_22, %c0_23] : memref<1x32xf32, #tpu.memory_space<vmem>>, vector<1x32xf32>
      %24 = vector.broadcast %23 : vector<1x32xf32> to vector<128x32xf32>
      %25 = arith.addf %22, %24 : vector<128x32xf32>
      %26 = arith.mulf %25, %25 : vector<128x32xf32>
      %cst_24 = arith.constant dense<0.000000e+00> : vector<128xf32>
      %27 = vector.multi_reduction <add>, %26, %cst_24 [1] : vector<128x32xf32> to vector<128xf32>
      %28 = vector.shape_cast %27 : vector<128xf32> to vector<128x1xf32>
      %cst_25 = arith.constant 1.000000e-24 : f32
      %29 = vector.broadcast %cst_25 : f32 to vector<128x1xf32>
      %30 = arith.maximumf %28, %29 : vector<128x1xf32>
      %31 = math.rsqrt %30 : vector<128x1xf32>
      %32 = vector.broadcast %31 : vector<128x1xf32> to vector<128x32xf32>
      %33 = arith.mulf %25, %32 : vector<128x32xf32>
      %cst_26 = arith.constant 0.000000e+00 : f32
      %34 = vector.broadcast %cst_26 : f32 to vector<128x32xf32>
      %35 = arith.maximumf %33, %34 : vector<128x32xf32>
      %c0_27 = arith.constant 0 : index
      %c0_28 = arith.constant 0 : index
      %36 = vector.load %arg9[%c0_27, %c0_28] : memref<32x128xf32, #tpu.memory_space<vmem>>, vector<32x128xf32>
      %cst_29 = arith.constant dense<0.000000e+00> : vector<128x128xf32>
      %37 = tpu.matmul %35, %36, %cst_29 {dimension_numbers = #tpu.dot_dimension_numbers<[1], [0], [0], [1], [0, 0, 1, 1], [], []>} : vector<128x32xf32>, vector<32x128xf32>, vector<128x128xf32> -> vector<128x128xf32>
      %c0_30 = arith.constant 0 : index
      %c0_31 = arith.constant 0 : index
      %38 = vector.load %arg10[%c0_30, %c0_31] : memref<1x128xf32, #tpu.memory_space<vmem>>, vector<1x128xf32>
      %39 = vector.broadcast %38 : vector<1x128xf32> to vector<128x128xf32>
      %40 = arith.addf %37, %39 : vector<128x128xf32>
      %c0_32 = arith.constant 0 : index
      %c0_33 = arith.constant 0 : index
      %41 = vector.load %arg11[%c0_32, %c0_33] : memref<128x128xf32, #tpu.memory_space<vmem>>, vector<128x128xf32>
      tpu.vector_store %arg11[%c0_32, %c0_33], %40 {strides = array<i32>} : memref<128x128xf32, #tpu.memory_space<vmem>>, vector<128x128xf32>,
    } else {
    }
    return
  }
  func.func @transform_0(%arg0: i32, %arg1: i32) -> (i32, i32) {
    %c0_i32 = arith.constant 0 : i32
    return %arg0, %arg1 : i32, i32
  }
  func.func @transform_1(%arg0: i32, %arg1: i32) -> (i32, i32) {
    %c0_i32 = arith.constant 0 : i32
    %c0_i32_0 = arith.constant 0 : i32
    return %arg1, %c0_i32 : i32, i32
  }
  func.func @transform_2(%arg0: i32, %arg1: i32) -> (i32, i32) {
    %c0_i32 = arith.constant 0 : i32
    %c0_i32_0 = arith.constant 0 : i32
    return %arg0, %c0_i32 : i32, i32
  }
  func.func @transform_3(%arg0: i32, %arg1: i32) -> (i32, i32) {
    %c0_i32 = arith.constant 0 : i32
    %c0_i32_0 = arith.constant 0 : i32
    return %arg0, %c0_i32 : i32, i32
  }
  func.func @transform_4(%arg0: i32, %arg1: i32) -> (i32, i32) {
    %c0_i32 = arith.constant 0 : i32
    %c0_i32_0 = arith.constant 0 : i32
    %c0_i32_1 = arith.constant 0 : i32
    return %c0_i32, %c0_i32_0 : i32, i32
  }
  func.func @transform_5(%arg0: i32, %arg1: i32) -> (i32, i32) {
    %c0_i32 = arith.constant 0 : i32
    %c0_i32_0 = arith.constant 0 : i32
    %c0_i32_1 = arith.constant 0 : i32
    return %c0_i32, %c0_i32_0 : i32, i32
  }
  func.func @transform_6(%arg0: i32, %arg1: i32) -> (i32, i32) {
    %c0_i32 = arith.constant 0 : i32
    %c0_i32_0 = arith.constant 0 : i32
    %c0_i32_1 = arith.constant 0 : i32
    return %c0_i32, %c0_i32_0 : i32, i32
  }
  func.func @transform_7(%arg0: i32, %arg1: i32) -> (i32, i32) {
    %c0_i32 = arith.constant 0 : i32
    %c0_i32_0 = arith.constant 0 : i32
    %c0_i32_1 = arith.constant 0 : i32
    return %c0_i32, %c0_i32_0 : i32, i32
  }
  func.func @transform_8(%arg0: i32, %arg1: i32) -> (i32, i32) {
    %c0_i32 = arith.constant 0 : i32
    %c0_i32_0 = arith.constant 0 : i32
    %c0_i32_1 = arith.constant 0 : i32
    return %c0_i32, %c0_i32_0 : i32, i32
  }
  func.func @transform_9(%arg0: i32, %arg1: i32) -> (i32, i32) {
    %c0_i32 = arith.constant 0 : i32
    %c0_i32_0 = arith.constant 0 : i32
    return %arg0, %c0_i32 : i32, i32
  }
}

</mosaic_0001>

<bundles_post_ra>
// kernel: tpu_custom_call.1
= control target key start
LH: loop header
LB: loop body
LE: loop exit
PB: predicated region body
PF: predicated region fallthrough
CT: control target
= control target key end

     0   :  { %v1571_v5 = vmov 0   ;;  %vm38_vm0 = vcmask 130048   ;;  %s2030_s0 = inlined_call_operand.vmem [shape: bf16[128,128], index: 0, kind: input, shape index: {}]   ;;  %s2031_s1 = inlined_call_operand.vmem [shape: f32[128,16], index: 1, kind: input, shape index: {}]   ;;  %s2032_s2 = inlined_call_operand.vmem [shape: f32[128,16], index: 2, kind: input, shape index: {}]   ;;  %s2033_s3 = inlined_call_operand.vmem [shape: f32[128,1], index: 3, kind: input, shape index: {}]   ;;  %s2034_s4 = inlined_call_operand.vmem [shape: f32[16,32], index: 4, kind: input, shape index: {}]   ;;  %s2035_s5 = inlined_call_operand.vmem [shape: f32[16,32], index: 5, kind: input, shape index: {}]   ;;  %s2036_s6 = inlined_call_operand.vmem [shape: f32[1,32], index: 6, kind: input, shape index: {}]   ;;  %s2037_s7 = inlined_call_operand.vmem [shape: f32[32,128], index: 7, kind: input, shape index: {}]   ;;  %s2038_s8 = inlined_call_operand.vmem [shape: f32[1,128], index: 8, kind: input, shape index: {}]   ;;  %s2039_s9 = inlined_call_operand.hbm [shape: f32[128,128], index: 9, kind: output, shape index: {}]  }
   0x1   :  { %v87_v0 = vld [vmem:[%s2031_s1] sm:$0xff]  ;;  %v88_v1 = vld [vmem:[%s2031_s1 + $0x8] sm:$0xff]  ;;  %v89_v2 = vld [vmem:[%s2031_s1 + $0x10] sm:$0xff]  ;;  %1505 = vset.pattern.permute.xlu0 %v1571_v5  ;;  %1506 = vset.pattern.permute.xlu1 %v1571_v5 }
   0x2   :  { %v103_v3 = vpack.c.bf16 %v88_v1, %v87_v0  ;;  %v90_v4 = vld [vmem:[%s2031_s1 + $0x18] sm:$0xff]  ;;  %v91_v7 = vld [vmem:[%s2031_s1 + $0x20] sm:$0xff]  ;;  %v92_v8 = vld [vmem:[%s2031_s1 + $0x28] sm:$0xff] }
   0x3   :  { %v104_v6 = vpack.c.bf16 %v90_v4, %v89_v2  ;;  %v93_v9 = vld [vmem:[%s2031_s1 + $0x30] sm:$0xff]  ;;  %v105_v10 = vpack.c.bf16 %v92_v8, %v91_v7  ;;  %v94_v11 = vld [vmem:[%s2031_s1 + $0x38] sm:$0xff]  ;;  %v1507_v12 = vld [vmem:[%s2030_s0] sm:$0xff]  }
   0x4   :  { %1344 = vmatprep.subr.bf16.mxu0 %v103_v3  ;;  %1360 = vmatprep.mubr.bf16.mxu0 %v1507_v12  ;;  %v106_v13 = vpack.c.bf16 %v94_v11, %v93_v9  ;;  %v95_v14 = vld [vmem:[%s2031_s1 + $0x40] sm:$0xff]  ;;  %v96_v15 = vld [vmem:[%s2031_s1 + $0x48] sm:$0xff]  ;;  %v310_v18 = vld [vmem:[%s2033_s3 + $0x10] sm:$0xff] }
   0x5   :  { %1345 = vmatpush3.bf16.msra.mxu0 %v103_v3  ;;  %v107_v16 = vpack.c.bf16 %v96_v15, %v95_v14  ;;  %v308_v17 = vld [vmem:[%s2033_s3] sm:$0xff]  ;;  %v97_v19 = vld [vmem:[%s2031_s1 + $0x50] sm:$0xff]  ;;  %v98_v20 = vld [vmem:[%s2031_s1 + $0x58] sm:$0xff]  ;;  %336 = vperm.xlu1 %1506, %v310_v18  }
   0x6   :  { %1346 = vmatprep.subr.bf16.mxu0 %v104_v6  ;;  %326 = vperm.xlu0 %1505, %v308_v17   ;;  %v309_v21 = vld [vmem:[%s2033_s3 + $0x8] sm:$0xff]  ;;  %v311_v22 = vld [vmem:[%s2033_s3 + $0x18] sm:$0xff]  ;;  %v108_v23 = vpack.c.bf16 %v98_v20, %v97_v19  ;;  %v99_v24 = vld [vmem:[%s2031_s1 + $0x60] sm:$0xff] }
   0x7   :  { %v100_v25 = vld [vmem:[%s2031_s1 + $0x68] sm:$0xff]  ;;  %v312_v26 = vld [vmem:[%s2033_s3 + $0x20] sm:$0xff]  ;;  %v101_v36 = vld [vmem:[%s2031_s1 + $0x70] sm:$0xff] }
   0x8   :  { %v313_v27 = vld [vmem:[%s2033_s3 + $0x28] sm:$0xff]  ;;  %v438_v28 = vld [vmem:[%s2035_s5] sm:$0xff]  ;;  %v109_v34 = vpack.c.bf16 %v100_v25, %v99_v24  ;;  %v102_v37 = vld [vmem:[%s2031_s1 + $0x78] sm:$0xff] }
   0x9   :  { %1347 = vmatpush3.bf16.msra.mxu0 %v104_v6  ;;  %341 = vperm.xlu1 %1506, %v311_v22   ;;  %v439_v29 = vld [vmem:[%s2035_s5 + $0x8] sm:$0xff]  ;;  %v420_v30 = vld [vmem:[%s2032_s2] sm:$0xff] }
   0xa   :  { %1348 = vmatprep.subr.bf16.mxu0 %v105_v10  ;;  %331 = vperm.xlu0 %1505, %v309_v21   ;;  %v436_v31 = vld [vmem:[%s2034_s4] sm:$0xff]  ;;  %v1464_v32 = vpack.c.bf16 %v439_v29, %v438_v28  ;;  %v437_v33 = vld [vmem:[%s2034_s4 + $0x8] sm:$0xff] }
   0xb   :  { %1380 = vmatprep.mubr.msk.f32.mxu1 %vm38_vm0, %v420_v30  ;;  %v1468_v35 = vpack.c.bf16 %v437_v33, %v436_v31 }
   0xd   :  { %1349 = vmatpush3.bf16.msra.mxu0 %v105_v10  ;;  %351 = vperm.xlu1 %1506, %v313_v27  }
   0xe   :  { %1350 = vmatprep.subr.bf16.mxu0 %v106_v13  ;;  %346 = vperm.xlu0 %1505, %v312_v26  }
  0x11   :  { %1351 = vmatpush3.bf16.msra.mxu0 %v106_v13 }
  0x12   :  { %1352 = vmatprep.subr.bf16.mxu0 %v107_v16 }
  0x15   :  { %1353 = vmatpush3.bf16.msra.mxu0 %v107_v16 }
  0x16   :  { %1354 = vmatprep.subr.bf16.mxu0 %v108_v23 }
  0x17   :  { %14 = vsyncpa [#allocation4], 0  ;;  %v314_v38 = vld [vmem:[%s2033_s3 + $0x30] sm:$0xff]  ;;  %v315_v39 = vld [vmem:[%s2033_s3 + $0x38] sm:$0xff]  ;;  %1465 = vmatprep.subr.bf16.mxu1 %v1464_v32  ;;  %v110_v41 = vpack.c.bf16 %v102_v37, %v101_v36  ;;  %v1572_v47 = vmov 0.0   ;;  %vm865_vm1 = vcmask 261120  }
  0x18   :  { %1467 = vmatpush3.bf16.msra.mxu1 %v1464_v32  ;;  %v421_v40 = vld [vmem:[%s2032_s2 + $0x8] sm:$0xff]  ;;  %356 = vperm.xlu0 %1505, %v314_v38   ;;  %v422_v42 = vld [vmem:[%s2032_s2 + $0x10] sm:$0xff]  ;;  %v316_v43 = vld [vmem:[%s2033_s3 + $0x40] sm:$0xff]  ;;  %41 = vst.msk [vmem:[#allocation2 + $0x10] sm:$0xff] %vm38_vm0, %v1572_v47 }
  0x19   :  { %1355 = vmatpush3.bf16.msra.mxu0 %v108_v23  ;;  %1469 = vmatprep.subr.bf16.mxu1 %v1468_v35  ;;  %v317_v44 = vld [vmem:[%s2033_s3 + $0x48] sm:$0xff]  ;;  %v423_v45 = vld [vmem:[%s2032_s2 + $0x18] sm:$0xff]  ;;  %v424_v46 = vld [vmem:[%s2032_s2 + $0x20] sm:$0xff]  ;;  %39 = vst.msk [vmem:[#allocation2] sm:$0xff] %vm38_vm0, %v1572_v47 }
  0x1a   :  { %1356 = vmatprep.subr.bf16.mxu0 %v109_v34  ;;  %361 = vperm.xlu1 %1506, %v315_v39   ;;  %40 = vst.msk [vmem:[#allocation2 + $0x8] sm:$0xff] %vm38_vm0, %v1572_v47  ;;  %42 = vst.msk [vmem:[#allocation2 + $0x18] sm:$0xff] %vm38_vm0, %v1572_v47  ;;  %v1508_v48 = vld [vmem:[%s2030_s0 + $0x8] sm:$0xff]   ;;  %v318_v49 = vld [vmem:[%s2033_s3 + $0x50] sm:$0xff] }
  0x1b   :  { %1381 = vmatmul.mubr.msk.f32.vlgmr.msra.gmra.mrb[0].mxu1 %vm38_vm0, %v421_v40  ;;  %43 = vst.msk [vmem:[#allocation2 + $0x20] sm:$0xff] %vm38_vm0, %v1572_v47  ;;  %44 = vst.msk [vmem:[#allocation2 + $0x28] sm:$0xff] %vm38_vm0, %v1572_v47  ;;  %v319_v50 = vld [vmem:[%s2033_s3 + $0x58] sm:$0xff]  ;;  %v1509_v51 = vld [vmem:[%s2030_s0 + $0x10] sm:$0xff]  }
  0x1c   :  { %1471 = vmatpush3.bf16.msra.mxu1 %v1468_v35  ;;  %1383 = vmatprep.mubr.msk.f32.mxu1 %vm38_vm0, %v422_v42  ;;  %45 = vst.msk [vmem:[#allocation2 + $0x30] sm:$0xff] %vm38_vm0, %v1572_v47  ;;  %46 = vst.msk [vmem:[#allocation2 + $0x38] sm:$0xff] %vm38_vm0, %v1572_v47  ;;  %v425_v52 = vld [vmem:[%s2032_s2 + $0x28] sm:$0xff]  ;;  %v426_v53 = vld [vmem:[%s2032_s2 + $0x30] sm:$0xff] }
  0x1d   :  { %1357 = vmatpush3.bf16.msra.mxu0 %v109_v34  ;;  %366 = vperm.xlu0 %1505, %v316_v43   ;;  %47 = vst.msk [vmem:[#allocation2 + $0x40] sm:$0xff] %vm38_vm0, %v1572_v47  ;;  %48 = vst.msk [vmem:[#allocation2 + $0x48] sm:$0xff] %vm38_vm0, %v1572_v47  ;;  %v320_v54 = vld [vmem:[%s2033_s3 + $0x60] sm:$0xff]  ;;  %v321_v55 = vld [vmem:[%s2033_s3 + $0x68] sm:$0xff] }
  0x1e   :  { %1358 = vmatprep.subr.bf16.mxu0 %v110_v41  ;;  %371 = vperm.xlu1 %1506, %v317_v44   ;;  %49 = vst.msk [vmem:[#allocation2 + $0x50] sm:$0xff] %vm38_vm0, %v1572_v47  ;;  %50 = vst.msk [vmem:[#allocation2 + $0x58] sm:$0xff] %vm38_vm0, %v1572_v47  ;;  %v427_v56 = vld [vmem:[%s2032_s2 + $0x38] sm:$0xff]  ;;  %v428_v57 = vld [vmem:[%s2032_s2 + $0x40] sm:$0xff] }
  0x1f   :  { %51 = vst.msk [vmem:[#allocation2 + $0x60] sm:$0xff] %vm38_vm0, %v1572_v47  ;;  %52 = vst.msk [vmem:[#allocation2 + $0x68] sm:$0xff] %vm38_vm0, %v1572_v47  ;;  %1384 = vmatmul.mubr.msk.f32.gmra.mrb[2].mxu1 %vm38_vm0, %v423_v45  ;;  %v1510_v58 = vld [vmem:[%s2030_s0 + $0x18] sm:$0xff]   ;;  %v322_v59 = vld [vmem:[%s2033_s3 + $0x70] sm:$0xff] }
  0x20   :  { %53 = vst.msk [vmem:[#allocation2 + $0x70] sm:$0xff] %vm38_vm0, %v1572_v47  ;;  %54 = vst.msk [vmem:[#allocation2 + $0x78] sm:$0xff] %vm38_vm0, %v1572_v47  ;;  %1386 = vmatprep.mubr.msk.f32.mxu1 %vm38_vm0, %v424_v46  ;;  %v323_v60 = vld [vmem:[%s2033_s3 + $0x78] sm:$0xff]  ;;  %v1511_v61 = vld [vmem:[%s2030_s0 + $0x20] sm:$0xff]  }
  0x21   :  { %1359 = vmatpush3.bf16.msra.mxu0 %v110_v41  ;;  %376 = vperm.xlu0 %1505, %v318_v49   ;;  %v1512_v62 = vld [vmem:[%s2030_s0 + $0x28] sm:$0xff]   ;;  %v1513_v63 = vld [vmem:[%s2030_s0 + $0x30] sm:$0xff]   ;;  %v1514_v0 = vld [vmem:[%s2030_s0 + $0x38] sm:$0xff]  }
  0x22   :  { %381 = vperm.xlu1 %1506, %v319_v50   ;;  %v429_v1 = vld [vmem:[%s2032_s2 + $0x48] sm:$0xff]  ;;  %v430_v2 = vld [vmem:[%s2032_s2 + $0x50] sm:$0xff]  ;;  %v431_v3 = vld [vmem:[%s2032_s2 + $0x58] sm:$0xff] }
  0x23   :  { %1387 = vmatmul.mubr.msk.f32.gmra.mrb[4].mxu1 %vm38_vm0, %v425_v52  ;;  %v432_v4 = vld [vmem:[%s2032_s2 + $0x60] sm:$0xff]  ;;  %v433_v5 = vld [vmem:[%s2032_s2 + $0x68] sm:$0xff]  ;;  %v434_v6 = vld [vmem:[%s2032_s2 + $0x70] sm:$0xff] }
  0x24   :  { %1361 = vmatmul.mubr.bf16.vlgmr.msra.gmra.mrb[0].mxu0 %v1508_v48  ;;  %1389 = vmatprep.mubr.msk.f32.mxu1 %vm38_vm0, %v426_v53  ;;  %v435_v7 = vld [vmem:[%s2032_s2 + $0x78] sm:$0xff]  ;;  %v57_v9 = vld [vmem:[#allocation2 + $0x10] sm:$0xff]  ;;  %v55_v11 = vld [vmem:[#allocation2] sm:$0xff] }
  0x25   :  { %1364 = vmatprep.mubr.bf16.mxu0 %v1509_v51  ;;  %386 = vperm.xlu0 %1505, %v320_v54   ;;  %v58_v13 = vld [vmem:[#allocation2 + $0x18] sm:$0xff]  ;;  %v56_v16 = vld [vmem:[#allocation2 + $0x8] sm:$0xff]  ;;  %v61_v24 = vld [vmem:[#allocation2 + $0x30] sm:$0xff] }
  0x26   :  { %391 = vperm.xlu1 %1506, %v321_v55   ;;  %v59_v25 = vld [vmem:[#allocation2 + $0x20] sm:$0xff]  ;;  %v62_v28 = vld [vmem:[#allocation2 + $0x38] sm:$0xff]  ;;  %v60_v31 = vld [vmem:[#allocation2 + $0x28] sm:$0xff] }
  0x27   :  { %1390 = vmatmul.mubr.msk.f32.gmra.mrb[6].mxu1 %vm38_vm0, %v427_v56  ;;  %v65_v43 = vld [vmem:[#allocation2 + $0x50] sm:$0xff]  ;;  %v63_v45 = vld [vmem:[#allocation2 + $0x40] sm:$0xff]  ;;  %v66_v49 = vld [vmem:[#allocation2 + $0x58] sm:$0xff] }
  0x28   :  { %1392 = vmatprep.mubr.msk.f32.mxu1 %vm38_vm0, %v428_v57  ;;  %v64_v53 = vld [vmem:[#allocation2 + $0x48] sm:$0xff] }
  0x29   :  { %396 = vperm.xlu0 %1505, %v322_v59  }
  0x2a   :  { %401 = vperm.xlu1 %1506, %v323_v60  }
  0x2b   :  { %1393 = vmatmul.mubr.msk.f32.gmra.mrb[8].mxu1 %vm38_vm0, %v429_v1  ;;  %v69_v1 = vld [vmem:[#allocation2 + $0x70] sm:$0xff] }
  0x2c   :  { %1365 = vmatmul.mubr.bf16.gmra.mrb[4].mxu0 %v1510_v58  ;;  %1395 = vmatprep.mubr.msk.f32.mxu1 %vm38_vm0, %v430_v2 }
  0x2d   :  { %1368 = vmatprep.mubr.bf16.mxu0 %v1511_v61 }
  0x2f   :  { %1396 = vmatmul.mubr.msk.f32.gmra.mrb[10].mxu1 %vm38_vm0, %v431_v3 }
  0x30   :  { %1398 = vmatprep.mubr.msk.f32.mxu1 %vm38_vm0, %v432_v4  ;;  %v67_v4 = vld [vmem:[#allocation2 + $0x60] sm:$0xff] }
  0x33   :  { %1399 = vmatmul.mubr.msk.f32.gmra.mrb[12].mxu1 %vm38_vm0, %v433_v5 }
  0x34   :  { %1369 = vmatmul.mubr.bf16.gmra.mrb[8].mxu0 %v1512_v62  ;;  %1401 = vmatprep.mubr.msk.f32.mxu1 %vm38_vm0, %v434_v6 }
  0x35   :  { %1372 = vmatprep.mubr.bf16.mxu0 %v1513_v63 }
  0x37   :  { %1402 = vmatmul.mubr.msk.f32.gmra.mrb[14].mxu1 %vm38_vm0, %v435_v7 }
  0x3c   :  { %1373 = vmatmul.mubr.bf16.gmra.mrb[12].mxu0 %v1514_v0 }
  0x84   :  { %v337_v10 = vpop.permute.xlu1 %336 }
  0x85   :  { %v327_v8 = vpop.permute.xlu0 %326 }
  0x88   :  { %v342_v23 = vpop.permute.xlu1 %341 }
  0x89   :  { %v332_v17 = vpop.permute.xlu0 %331 }
  0x8c   :  { %v352_v34 = vpop.permute.xlu1 %351 }
  0x8d   :  { %v347_v26 = vpop.permute.xlu0 %346 }
  0x97   :  { %v357_v42 = vpop.permute.xlu0 %356 }
  0x99   :  { %v362_v50 = vpop.permute.xlu1 %361 }
  0x9c   :  { %v367_v60 = vpop.permute.xlu0 %366 }
  0x9d   :  { %v372_v3 = vpop.permute.xlu1 %371 }
  0xf7   :  { %v1362_v12 = vpop.f32.mrb[0].mxu0 }
  0xf8   :  { %v258_v14 = vadd.f32 %v1362_v12, %v57_v9  ;;  %v193_v15 = vpop.f32.mrb[1].mxu0  ;;  %v377_v12 = vpop.permute.xlu0 %376 }
  0xf9   :  { %v256_v18 = vadd.f32 %v193_v15, %v55_v11  ;;  %v1363_v19 = vpop.f32.mrb[2].mxu0  ;;  %v68_v11 = vld [vmem:[#allocation2 + $0x68] sm:$0xff] }
  0xfa   :  { %275 = vst.msk [vmem:[#allocation2 + $0x10] sm:$0xff] %vm38_vm0, %v258_v14  ;;  %v259_v20 = vadd.f32 %v1363_v19, %v58_v13  ;;  %v196_v21 = vpop.f32.mrb[3].mxu0 }
  0xfb   :  { %273 = vst.msk [vmem:[#allocation2] sm:$0xff] %vm38_vm0, %v256_v18  ;;  %v257_v22 = vadd.f32 %v196_v21, %v56_v16 }
  0xfc   :  { %276 = vst.msk [vmem:[#allocation2 + $0x18] sm:$0xff] %vm38_vm0, %v259_v20 }
  0xfd   :  { %274 = vst.msk [vmem:[#allocation2 + $0x8] sm:$0xff] %vm38_vm0, %v257_v22  ;;  %v382_v22 = vpop.permute.xlu1 %381 }
  0xff   :  { %v1366_v27 = vpop.f32.mrb[4].mxu0 }
 0x100   :  { %v262_v29 = vadd.f32 %v1366_v27, %v61_v24  ;;  %v209_v30 = vpop.f32.mrb[5].mxu0  ;;  %v387_v27 = vpop.permute.xlu0 %386 }
 0x101   :  { %v260_v32 = vadd.f32 %v209_v30, %v59_v25  ;;  %v1367_v33 = vpop.f32.mrb[6].mxu0  ;;  %v294_v40 = vld [vmem:[#allocation2 + $0x10] sm:$0xff] }
 0x102   :  { %279 = vst.msk [vmem:[#allocation2 + $0x30] sm:$0xff] %vm38_vm0, %v262_v29  ;;  %v263_v35 = vadd.f32 %v1367_v33, %v62_v28  ;;  %v212_v36 = vpop.f32.mrb[7].mxu0  ;;  %v292_v37 = vld [vmem:[#allocation2] sm:$0xff]  ;;  %v406_v46 = vmul.f32 %v337_v10, %v294_v40  ;;  %v392_v29 = vpop.permute.xlu1 %391 }
 0x103   :  { %277 = vst.msk [vmem:[#allocation2 + $0x20] sm:$0xff] %vm38_vm0, %v260_v32  ;;  %v261_v38 = vadd.f32 %v212_v36, %v60_v31  ;;  %v404_v39 = vmul.f32 %v327_v8, %v292_v37  ;;  %v295_v47 = vld [vmem:[#allocation2 + $0x18] sm:$0xff]  ;;  %v1873_v40 = vld [vmem:[%s2036_s6] ss:$0 sm:$0xff] }
 0x104   :  { %280 = vst.msk [vmem:[#allocation2 + $0x38] sm:$0xff] %vm38_vm0, %v263_v35  ;;  %v293_v41 = vld [vmem:[#allocation2 + $0x8] sm:$0xff]  ;;  %v407_v56 = vmul.f32 %v342_v23, %v295_v47  ;;  %v70_v8 = vld [vmem:[#allocation2 + $0x78] sm:$0xff] }
 0x105   :  { %278 = vst.msk [vmem:[#allocation2 + $0x28] sm:$0xff] %vm38_vm0, %v261_v38  ;;  %1408 = vmatprep.mubr.msk.f32.mxu1 %vm38_vm0, %v404_v39  ;;  %v405_v44 = vmul.f32 %v332_v17, %v293_v41 }
 0x106   :  { %v402_v38 = vpop.permute.xlu1 %401 }
 0x107   :  { %v1370_v48 = vpop.f32.mrb[8].mxu0  ;;  %1409 = vmatmul.mubr.msk.f32.vlgmr.msra.gmra.mrb[0].mxu1 %vm38_vm0, %v405_v44 }
 0x108   :  { %v266_v51 = vadd.f32 %v1370_v48, %v65_v43  ;;  %v225_v52 = vpop.f32.mrb[9].mxu0  ;;  %1411 = vmatprep.mubr.msk.f32.mxu1 %vm38_vm0, %v406_v46 }
 0x109   :  { %v264_v54 = vadd.f32 %v225_v52, %v63_v45  ;;  %v1371_v55 = vpop.f32.mrb[10].mxu0  ;;  %v298_v63 = vld [vmem:[#allocation2 + $0x30] sm:$0xff] }
 0x10a   :  { %283 = vst.msk [vmem:[#allocation2 + $0x50] sm:$0xff] %vm38_vm0, %v266_v51  ;;  %v267_v57 = vadd.f32 %v1371_v55, %v66_v49  ;;  %v228_v58 = vpop.f32.mrb[11].mxu0  ;;  %v296_v59 = vld [vmem:[#allocation2 + $0x20] sm:$0xff]  ;;  %v410_v5 = vmul.f32 %v357_v42, %v298_v63 }
 0x10b   :  { %281 = vst.msk [vmem:[#allocation2 + $0x40] sm:$0xff] %vm38_vm0, %v264_v54  ;;  %v265_v61 = vadd.f32 %v228_v58, %v64_v53  ;;  %1412 = vmatmul.mubr.msk.f32.gmra.mrb[2].mxu1 %vm38_vm0, %v407_v56  ;;  %v408_v62 = vmul.f32 %v347_v26, %v296_v59  ;;  %v299_v6 = vld [vmem:[#allocation2 + $0x38] sm:$0xff] }
 0x10c   :  { %284 = vst.msk [vmem:[#allocation2 + $0x58] sm:$0xff] %vm38_vm0, %v267_v57  ;;  %v297_v0 = vld [vmem:[#allocation2 + $0x28] sm:$0xff]  ;;  %v411_v15 = vmul.f32 %v362_v50, %v299_v6 }
 0x10d   :  { %282 = vst.msk [vmem:[#allocation2 + $0x48] sm:$0xff] %vm38_vm0, %v265_v61  ;;  %1414 = vmatprep.mubr.msk.f32.mxu1 %vm38_vm0, %v408_v62  ;;  %v409_v2 = vmul.f32 %v352_v34, %v297_v0  ;;  %v397_v34 = vpop.permute.xlu0 %396 }
 0x10f   :  { %v1374_v7 = vpop.f32.mrb[12].mxu0  ;;  %1415 = vmatmul.mubr.msk.f32.gmra.mrb[4].mxu1 %vm38_vm0, %v409_v2 }
 0x110   :  { %v270_v9 = vadd.f32 %v1374_v7, %v69_v1  ;;  %v241_v10 = vpop.f32.mrb[13].mxu0  ;;  %1417 = vmatprep.mubr.msk.f32.mxu1 %vm38_vm0, %v410_v5 }
 0x111   :  { %v268_v13 = vadd.f32 %v241_v10, %v67_v4  ;;  %v1375_v14 = vpop.f32.mrb[14].mxu0  ;;  %v302_v21 = vld [vmem:[#allocation2 + $0x50] sm:$0xff] }
 0x112   :  { %287 = vst.msk [vmem:[#allocation2 + $0x70] sm:$0xff] %vm38_vm0, %v270_v9  ;;  %v271_v16 = vadd.f32 %v1375_v14, %v70_v8  ;;  %v244_v17 = vpop.f32.mrb[15].mxu0  ;;  %v300_v18 = vld [vmem:[#allocation2 + $0x40] sm:$0xff]  ;;  %v414_v25 = vmul.f32 %v377_v12, %v302_v21 }
 0x113   :  { %285 = vst.msk [vmem:[#allocation2 + $0x60] sm:$0xff] %vm38_vm0, %v268_v13  ;;  %v269_v19 = vadd.f32 %v244_v17, %v68_v11  ;;  %1418 = vmatmul.mubr.msk.f32.gmra.mrb[6].mxu1 %vm38_vm0, %v411_v15  ;;  %v412_v20 = vmul.f32 %v367_v60, %v300_v18  ;;  %v303_v26 = vld [vmem:[#allocation2 + $0x58] sm:$0xff] }
 0x114   :  { %288 = vst.msk [vmem:[#allocation2 + $0x78] sm:$0xff] %vm38_vm0, %v271_v16  ;;  %v301_v23 = vld [vmem:[#allocation2 + $0x48] sm:$0xff]  ;;  %v415_v28 = vmul.f32 %v382_v22, %v303_v26 }
 0x115   :  { %286 = vst.msk [vmem:[#allocation2 + $0x68] sm:$0xff] %vm38_vm0, %v269_v19  ;;  %1420 = vmatprep.mubr.msk.f32.mxu1 %vm38_vm0, %v412_v20  ;;  %v413_v24 = vmul.f32 %v372_v3, %v301_v23 }
 0x117   :  { %1421 = vmatmul.mubr.msk.f32.gmra.mrb[8].mxu1 %vm38_vm0, %v413_v24 }
 0x118   :  { %1423 = vmatprep.mubr.msk.f32.mxu1 %vm38_vm0, %v414_v25 }
 0x119   :  { %v306_v32 = vld [vmem:[#allocation2 + $0x70] sm:$0xff] }
 0x11a   :  { %v304_v30 = vld [vmem:[#allocation2 + $0x60] sm:$0xff]  ;;  %v418_v36 = vmul.f32 %v397_v34, %v306_v32 }
 0x11b   :  { %1424 = vmatmul.mubr.msk.f32.gmra.mrb[10].mxu1 %vm38_vm0, %v415_v28  ;;  %v416_v31 = vmul.f32 %v387_v27, %v304_v30  ;;  %v307_v37 = vld [vmem:[#allocation2 + $0x78] sm:$0xff]  ;;  %v978_v27 = vld [vmem:[%s2037_s7] sm:$0xff]  ;;  %v979_v28 = vld [vmem:[%s2037_s7 + $0x8] sm:$0xff] }
 0x11c   :  { %v305_v33 = vld [vmem:[#allocation2 + $0x68] sm:$0xff]  ;;  %v419_v39 = vmul.f32 %v402_v38, %v307_v37 }
 0x11d   :  { %1426 = vmatprep.mubr.msk.f32.mxu1 %vm38_vm0, %v416_v31  ;;  %v417_v35 = vmul.f32 %v392_v29, %v305_v33  ;;  %v1472_v33 = vpack.c.bf16 %v979_v28, %v978_v27 }
 0x11f   :  { %1427 = vmatmul.mubr.msk.f32.gmra.mrb[12].mxu1 %vm38_vm0, %v417_v35  ;;  %1473 = vmatprep.subr.bf16.mxu0 %v1472_v33  ;;  %v980_v35 = vld [vmem:[%s2037_s7 + $0x10] sm:$0xff] }
 0x120   :  { %1429 = vmatprep.mubr.msk.f32.mxu1 %vm38_vm0, %v418_v36  ;;  %1480 = vmatprep.subr.bf16.mxu1 %v1472_v33  ;;  %v981_v36 = vld [vmem:[%s2037_s7 + $0x18] sm:$0xff] }
 0x121   :  { %1475 = vmatpush3.bf16.msra.mxu0 %v1472_v33  ;;  %1482 = vmatpush3.bf16.msra.mxu1 %v1472_v33 }
 0x123   :  { %1430 = vmatmul.mubr.msk.f32.gmra.mrb[14].mxu1 %vm38_vm0, %v419_v39 }
 0x1da   :  { %v1410_v41 = vpop.f32.mrb[0].mxu1 }
 0x1db   :  { %v1876_v42 = vadd.f32 %v1410_v41, %v1873_v40  ;;  %v747_v43 = vpop.f32.mrb[1].mxu1  ;;  %v1476_v41 = vpack.c.bf16 %v981_v36, %v980_v35 }
 0x1dc   :  { %v1879_v44 = vadd.f32 %v1873_v40, %v747_v43 }
 0x1dd   :  { %v850_v45 = vmul.f32 %v1876_v42, %v1876_v42  ;;  %1477 = vmatprep.subr.bf16.mxu0 %v1476_v41  ;;  %1481 = vmatprep.subr.bf16.mxu1 %v1476_v41 }
 0x1de   :  { %v1413_v46 = vpop.f32.mrb[2].mxu1  ;;  %v849_v47 = vmul.f32 %v1879_v44, %v1879_v44  ;;  %1479 = vmatpush3.bf16.msra.mxu0 %v1476_v41  ;;  %1483 = vmatpush3.bf16.msra.mxu1 %v1476_v41 }
 0x1df   :  { %v1886_v48 = vadd.f32 %v1413_v46, %v1873_v40  ;;  %v757_v49 = vpop.f32.mrb[3].mxu1  ;;  %v869_v50 = vsel %vm865_vm1, %v850_v45, 0.0 }
 0x1e0   :  { %v1890_v51 = vadd.f32 %v1873_v40, %v757_v49  ;;  %870 = vadd.xlane.f32.xlu1 %v869_v50  ;;  %v866_v52 = vsel %vm865_vm1, %v849_v47, 0.0 }
 0x1e1   :  { %867 = vadd.xlane.f32.xlu0 %v866_v52  ;;  %v852_v53 = vmul.f32 %v1886_v48, %v1886_v48 }
 0x1e2   :  { %v1416_v54 = vpop.f32.mrb[4].mxu1  ;;  %v851_v59 = vmul.f32 %v1890_v51, %v1890_v51 }
 0x1e3   :  { %v1896_v55 = vadd.f32 %v1416_v54, %v1873_v40  ;;  %v767_v56 = vpop.f32.mrb[5].mxu1  ;;  %v875_v57 = vsel %vm865_vm1, %v852_v53, 0.0 }
 0x1e4   :  { %v1900_v58 = vadd.f32 %v1873_v40, %v767_v56  ;;  %v872_v2 = vsel %vm865_vm1, %v851_v59, 0.0 }
 0x1e5   :  { %876 = vadd.xlane.f32.xlu0 %v875_v57  ;;  %v854_v60 = vmul.f32 %v1896_v55, %v1896_v55 }
 0x1e6   :  { %v1419_v61 = vpop.f32.mrb[6].mxu1  ;;  %v853_v1 = vmul.f32 %v1900_v58, %v1900_v58 }
 0x1e7   :  { %v1907_v62 = vadd.f32 %v1419_v61, %v1873_v40  ;;  %v777_v63 = vpop.f32.mrb[7].mxu1  ;;  %v881_v0 = vsel %vm865_vm1, %v854_v60, 0.0 }
 0x1e8   :  { %882 = vadd.xlane.f32.xlu1 %v881_v0  ;;  %v1914_v4 = vadd.f32 %v1873_v40, %v777_v63  ;;  %v878_v6 = vsel %vm865_vm1, %v853_v1, 0.0 }
 0x1e9   :  { %873 = vadd.xlane.f32.xlu0 %v872_v2  ;;  %v856_v7 = vmul.f32 %v1907_v62, %v1907_v62 }
 0x1ea   :  { %v1422_v3 = vpop.f32.mrb[8].mxu1  ;;  %v855_v13 = vmul.f32 %v1914_v4, %v1914_v4 }
 0x1eb   :  { %v787_v5 = vpop.f32.mrb[9].mxu1  ;;  %v887_v12 = vsel %vm865_vm1, %v856_v7, 0.0  ;;  %v1934_v16 = vadd.f32 %v1422_v3, %v1873_v40 }
 0x1ec   :  { %879 = vadd.xlane.f32.xlu1 %v878_v6  ;;  %v1920_v8 = vadd.f32 %v1873_v40, %v787_v5  ;;  %v884_v21 = vsel %vm865_vm1, %v855_v13, 0.0 }
 0x1ed   :  { %v858_v26 = vmul.f32 %v1934_v16, %v1934_v16 }
 0x1ee   :  { %v1425_v9 = vpop.f32.mrb[10].mxu1  ;;  %v857_v18 = vmul.f32 %v1920_v8, %v1920_v8 }
 0x1ef   :  { %v1923_v10 = vadd.f32 %v1425_v9, %v1873_v40  ;;  %v797_v11 = vpop.f32.mrb[11].mxu1  ;;  %v893_v34 = vsel %vm865_vm1, %v858_v26, 0.0 }
 0x1f0   :  { %v1929_v14 = vadd.f32 %v1873_v40, %v797_v11  ;;  %888 = vadd.xlane.f32.xlu1 %v887_v12  ;;  %v890_v25 = vsel %vm865_vm1, %v857_v18, 0.0 }
 0x1f1   :  { %v860_v15 = vmul.f32 %v1923_v10, %v1923_v10 }
 0x1f2   :  { %v1428_v17 = vpop.f32.mrb[12].mxu1  ;;  %v859_v23 = vmul.f32 %v1929_v14, %v1929_v14 }
 0x1f3   :  { %v1939_v19 = vadd.f32 %v1428_v17, %v1873_v40  ;;  %v807_v20 = vpop.f32.mrb[13].mxu1  ;;  %v899_v22 = vsel %vm865_vm1, %v860_v15, 0.0 }
 0x1f4   :  { %885 = vadd.xlane.f32.xlu1 %v884_v21  ;;  %900 = vadd.xlane.f32.xlu0 %v899_v22  ;;  %v1955_v29 = vadd.f32 %v1873_v40, %v807_v20  ;;  %v896_v31 = vsel %vm865_vm1, %v859_v23, 0.0 }
 0x1f5   :  { %v862_v32 = vmul.f32 %v1939_v19, %v1939_v19 }
 0x1f6   :  { %v1431_v24 = vpop.f32.mrb[14].mxu1  ;;  %v861_v39 = vmul.f32 %v1955_v29, %v1955_v29 }
 0x1f7   :  { %v817_v30 = vpop.f32.mrb[15].mxu1  ;;  %v905_v38 = vsel %vm865_vm1, %v862_v32, 0.0  ;;  %v1974_v43 = vadd.f32 %v1431_v24, %v1873_v40 }
 0x1f8   :  { %891 = vadd.xlane.f32.xlu1 %v890_v25  ;;  %897 = vadd.xlane.f32.xlu0 %v896_v31  ;;  %v1968_v37 = vadd.f32 %v1873_v40, %v817_v30  ;;  %v902_v45 = vsel %vm865_vm1, %v861_v39, 0.0 }
 0x1f9   :  { %v864_v49 = vmul.f32 %v1974_v43, %v1974_v43 }
 0x1fa   :  { %v863_v46 = vmul.f32 %v1968_v37, %v1968_v37 }
 0x1fb   :  { %v911_v50 = vsel %vm865_vm1, %v864_v49, 0.0 }
 0x1fc   :  { %894 = vadd.xlane.f32.xlu1 %v893_v34  ;;  %906 = vadd.xlane.f32.xlu0 %v905_v38  ;;  %v908_v47 = vsel %vm865_vm1, %v863_v46, 0.0 }
 0x200   :  { %903 = vadd.xlane.f32.xlu0 %v902_v45 }
 0x204   :  { %909 = vadd.xlane.f32.xlu0 %v908_v47 }
 0x208   :  { %912 = vadd.xlane.f32.xlu0 %v911_v50 }
 0x26d   :  { %v871_v52 = vpop.xlane.xlu1 %870 }
 0x26e   :  { %v915_v53 = vmax.f32 %v871_v52, 1e-24  ;;  %v868_v54 = vpop.xlane.xlu0 %867 }
 0x26f   :  { %v914_v40 = vmax.f32 %v868_v54, 1e-24 }
 0x270   :  { %1515 = vrsqrt.f32 %v915_v53 }
 0x271   :  { %1517 = vrsqrt.f32 %v914_v40 }
 0x272   :  { %v877_v56 = vpop.xlane.xlu0 %876 }
 0x273   :  { %v917_v57 = vmax.f32 %v877_v56, 1e-24 }
 0x275   :  { %v883_v59 = vpop.xlane.xlu1 %882  ;;  %1519 = vrsqrt.f32 %v917_v57 }
 0x276   :  { %v919_v60 = vmax.f32 %v883_v59, 1e-24  ;;  %v874_v61 = vpop.xlane.xlu0 %873 }
 0x277   :  { %v916_v63 = vmax.f32 %v874_v61, 1e-24 }
 0x279   :  { %1521 = vrsqrt.f32 %v916_v63  ;;  %v880_v0 = vpop.xlane.xlu1 %879 }
 0x27a   :  { %v1516_v1 = vpop.eup %1515  ;;  %1523 = vrsqrt.f32 %v919_v60  ;;  %v918_v2 = vmax.f32 %v880_v0, 1e-24 }
 0x27b   :  { %v1518_v3 = vpop.eup %1517  ;;  %v947_v5 = vmul.f32 %v1516_v1, %v1876_v42 }
 0x27c   :  { %1525 = vrsqrt.f32 %v918_v2  ;;  %v946_v6 = vmul.f32 %v1518_v3, %v1879_v44 }
 0x27d   :  { %v889_v7 = vpop.xlane.xlu1 %888  ;;  %v963_v12 = vmax.f32 %v947_v5, 0.0 }
 0x27e   :  { %v921_v9 = vmax.f32 %v889_v7, 1e-24  ;;  %v962_v11 = vmax.f32 %v946_v6, 0.0 }
 0x27f   :  { %v1520_v13 = vpop.eup %1519 }
 0x280   :  { %1440 = vmatprep.mubr.msk.f32.mxu0 %vm865_vm1, %v962_v11  ;;  %1527 = vrsqrt.f32 %v921_v9  ;;  %v949_v42 = vmul.f32 %v1520_v13, %v1886_v48 }
 0x281   :  { %1441 = vmatmul.mubr.msk.f32.vlgmr.msra.gmra.mrb[16].mxu0 %vm865_vm1, %v963_v12  ;;  %v886_v15 = vpop.xlane.xlu1 %885  ;;  %v901_v17 = vpop.xlane.xlu0 %900 }
 0x282   :  { %v920_v18 = vmax.f32 %v886_v15, 1e-24  ;;  %v925_v20 = vmax.f32 %v901_v17, 1e-24  ;;  %v965_v30 = vmax.f32 %v949_v42, 0.0 }
 0x283   :  { %v1522_v21 = vpop.eup %1521 }
 0x284   :  { %v1524_v22 = vpop.eup %1523  ;;  %1529 = vrsqrt.f32 %v920_v18  ;;  %v948_v44 = vmul.f32 %v1522_v21, %v1890_v51 }
 0x285   :  { %v892_v23 = vpop.xlane.xlu1 %891  ;;  %v898_v24 = vpop.xlane.xlu0 %897  ;;  %1531 = vrsqrt.f32 %v925_v20  ;;  %v951_v32 = vmul.f32 %v1524_v22, %v1896_v55 }
 0x286   :  { %v1526_v25 = vpop.eup %1525  ;;  %v922_v26 = vmax.f32 %v892_v23, 1e-24  ;;  %v924_v27 = vmax.f32 %v898_v24, 1e-24  ;;  %v964_v28 = vmax.f32 %v948_v44, 0.0 }
 0x287   :  { %v950_v31 = vmul.f32 %v1526_v25, %v1900_v58  ;;  %v967_v38 = vmax.f32 %v951_v32, 0.0 }
 0x288   :  { %1533 = vrsqrt.f32 %v922_v26  ;;  %1443 = vmatprep.mubr.msk.f32.mxu0 %vm865_vm1, %v964_v28 }
 0x289   :  { %1535 = vrsqrt.f32 %v924_v27  ;;  %1444 = vmatmul.mubr.msk.f32.gmra.mrb[18].mxu0 %vm865_vm1, %v965_v30  ;;  %v895_v48 = vpop.xlane.xlu1 %894  ;;  %v907_v51 = vpop.xlane.xlu0 %906  ;;  %v966_v33 = vmax.f32 %v950_v31, 0.0 }
 0x28a   :  { %v923_v34 = vmax.f32 %v895_v48, 1e-24  ;;  %v927_v35 = vmax.f32 %v907_v51, 1e-24  ;;  %v1528_v36 = vpop.eup %1527 }
 0x28b   :  { %1446 = vmatprep.mubr.msk.f32.mxu0 %vm865_vm1, %v966_v33  ;;  %v953_v41 = vmul.f32 %v1528_v36, %v1907_v62 }
 0x28c   :  { %1537 = vrsqrt.f32 %v923_v34 }
 0x28d   :  { %1539 = vrsqrt.f32 %v927_v35  ;;  %1447 = vmatmul.mubr.msk.f32.gmra.mrb[20].mxu0 %vm865_vm1, %v967_v38  ;;  %v904_v55 = vpop.xlane.xlu0 %903  ;;  %v969_v53 = vmax.f32 %v953_v41, 0.0 }
 0x28e   :  { %v1530_v58 = vpop.eup %1529  ;;  %v926_v39 = vmax.f32 %v904_v55, 1e-24 }
 0x28f   :  { %v952_v45 = vmul.f32 %v1530_v58, %v1914_v4  ;;  %v1532_v46 = vpop.eup %1531 }
 0x290   :  { %1541 = vrsqrt.f32 %v926_v39  ;;  %v957_v40 = vmul.f32 %v1532_v46, %v1923_v10 }
 0x291   :  { %v910_v47 = vpop.xlane.xlu0 %909  ;;  %v968_v49 = vmax.f32 %v952_v45, 0.0 }
 0x292   :  { %v1534_v50 = vpop.eup %1533  ;;  %v928_v52 = vmax.f32 %v910_v47, 1e-24  ;;  %v973_v0 = vmax.f32 %v957_v40, 0.0 }
 0x293   :  { %v1536_v54 = vpop.eup %1535  ;;  %1449 = vmatprep.mubr.msk.f32.mxu0 %vm865_vm1, %v968_v49  ;;  %v954_v56 = vmul.f32 %v1534_v50, %v1920_v8 }
 0x294   :  { %1543 = vrsqrt.f32 %v928_v52  ;;  %1450 = vmatmul.mubr.msk.f32.gmra.mrb[22].mxu0 %vm865_vm1, %v969_v53  ;;  %v956_v62 = vmul.f32 %v1536_v54, %v1929_v14 }
 0x295   :  { %v913_v4 = vpop.xlane.xlu0 %912  ;;  %v970_v57 = vmax.f32 %v954_v56, 0.0 }
 0x296   :  { %v1538_v59 = vpop.eup %1537  ;;  %v929_v60 = vmax.f32 %v913_v4, 1e-24  ;;  %v972_v61 = vmax.f32 %v956_v62, 0.0 }
 0x297   :  { %v1540_v63 = vpop.eup %1539  ;;  %1452 = vmatprep.mubr.msk.f32.mxu0 %vm865_vm1, %v970_v57  ;;  %v955_v10 = vmul.f32 %v1538_v59, %v1934_v16 }
 0x298   :  { %1545 = vrsqrt.f32 %v929_v60  ;;  %1455 = vmatprep.mubr.msk.f32.mxu1 %vm865_vm1, %v972_v61  ;;  %v959_v14 = vmul.f32 %v1540_v63, %v1939_v19 }
 0x299   :  { %1456 = vmatmul.mubr.msk.f32.vlgmr.msra.gmra.mrb[16].mxu1 %vm865_vm1, %v973_v0  ;;  %v971_v8 = vmax.f32 %v955_v10, 0.0 }
 0x29a   :  { %v1542_v1 = vpop.eup %1541  ;;  %v975_v6 = vmax.f32 %v959_v14, 0.0 }
 0x29b   :  { %1453 = vmatmul.mubr.msk.f32.gmra.mrb[24].mxu0 %vm865_vm1, %v971_v8  ;;  %v958_v2 = vmul.f32 %v1542_v1, %v1955_v29  ;;  %v1255_v29 = vld [vmem:[%s2038_s8] ss:$0 sm:$0xff]  ;;  %s1573_s8 = smov [#allocation3]  }
 0x29c   :  { %s1203_s21 = sshll.u32 %s1573_s8, 4  ;;  %s1204_s21 = int_to_ptr.vmem [resolvable:$true] %s1203_s21 }
 0x29d   :  { %v974_v3 = vmax.f32 %v958_v2, 0.0  ;;  %s1547_s3 = scalar_lea.vmem %s1204_s21, 2048  ;;  %p1552_p1 = scmp.lt.s32.totalorder %s1204_s21, %s1204_s21 }
 0x29e   :  { %v1544_v5 = vpop.eup %1543  ;;  %p1548_p0 = scmp.ne.s32.totalorder %s1204_s21, %s1547_s3  ;;  %p1553_p2 = scmp.lt.s32.totalorder %s1547_s3, %s1547_s3 }
 0x29f   :  { %1458 = vmatprep.mubr.msk.f32.mxu1 %vm865_vm1, %v974_v3  ;;  %v960_v16 = vmul.f32 %v1544_v5, %v1968_v37 }
 0x2a0   :  { %1459 = vmatmul.mubr.msk.f32.gmra.mrb[18].mxu1 %vm865_vm1, %v975_v6  ;;  %p1554_p3 = por %p1553_p2, %p1552_p1 }
 0x2a1   :  { %v976_v7 = vmax.f32 %v960_v16, 0.0 }
 0x2a2   :  { %v1546_v9 = vpop.eup %1545  ;;  %p1555_p4 = pnand %p1554_p3, %p1548_p0 }
 0x2a3   :  { %1461 = vmatprep.mubr.msk.f32.mxu1 %vm865_vm1, %v976_v7  ;;  %v961_v11 = vmul.f32 %v1546_v9, %v1974_v43 }
 0x2a5   :  { %v977_v19 = vmax.f32 %v961_v11, 0.0 }
 0x2a7   :  { %1462 = vmatmul.mubr.msk.f32.gmra.mrb[20].mxu1 %vm865_vm1, %v977_v19 }
 0x354   :  { %v1442_v12 = vpop.f32.mrb[16].mxu0 }
 0x355   :  { %v1109_v13 = vadd.f32 %v1442_v12, %v1255_v29  ;;  %v1103_v15 = vpop.f32.mrb[17].mxu0 }
 0x356   :  { %v1104_v17 = vadd.f32 %v1255_v29, %v1103_v15 }
 0x357   :  { %1183 = vst [vmem:[#allocation3 + $0x8] sm:$0xff] %v1109_v13 }
 0x358   :  { %1182 = vst [vmem:[#allocation3] sm:$0xff] %v1104_v17 }
 0x35c   :  { %v1445_v37 = vpop.f32.mrb[18].mxu0 }
 0x35d   :  { %v1119_v18 = vadd.f32 %v1445_v37, %v1255_v29  ;;  %v1113_v20 = vpop.f32.mrb[19].mxu0 }
 0x35e   :  { %v1114_v21 = vadd.f32 %v1255_v29, %v1113_v20 }
 0x35f   :  { %1185 = vst [vmem:[#allocation3 + $0x18] sm:$0xff] %v1119_v18 }
 0x360   :  { %1184 = vst [vmem:[#allocation3 + $0x10] sm:$0xff] %v1114_v21  ;;  %v1448_v43 = vpop.f32.mrb[20].mxu0 }
 0x361   :  { %v1129_v42 = vadd.f32 %v1448_v43, %v1255_v29  ;;  %v1123_v22 = vpop.f32.mrb[21].mxu0 }
 0x362   :  { %v1124_v44 = vadd.f32 %v1255_v29, %v1123_v22 }
 0x363   :  { %1187 = vst [vmem:[#allocation3 + $0x28] sm:$0xff] %v1129_v42 }
 0x364   :  { %1186 = vst [vmem:[#allocation3 + $0x20] sm:$0xff] %v1124_v44 }
 0x367   :  { %v1451_v23 = vpop.f32.mrb[22].mxu0 }
 0x368   :  { %v1139_v24 = vadd.f32 %v1451_v23, %v1255_v29  ;;  %v1133_v25 = vpop.f32.mrb[23].mxu0 }
 0x369   :  { %v1134_v26 = vadd.f32 %v1255_v29, %v1133_v25 }
 0x36a   :  { %1189 = vst [vmem:[#allocation3 + $0x38] sm:$0xff] %v1139_v24 }
 0x36b   :  { %1188 = vst [vmem:[#allocation3 + $0x30] sm:$0xff] %v1134_v26 }
 0x36c   :  { %v1457_v27 = vpop.f32.mrb[16].mxu1 }
 0x36d   :  { %v1159_v28 = vadd.f32 %v1457_v27, %v1255_v29  ;;  %v1153_v30 = vpop.f32.mrb[17].mxu1 }
 0x36e   :  { %v1154_v31 = vadd.f32 %v1255_v29, %v1153_v30  ;;  %v1454_v32 = vpop.f32.mrb[24].mxu0 }
 0x36f   :  { %1193 = vst [vmem:[#allocation3 + $0x58] sm:$0xff] %v1159_v28  ;;  %v1149_v48 = vadd.f32 %v1454_v32, %v1255_v29  ;;  %v1143_v51 = vpop.f32.mrb[25].mxu0 }
 0x370   :  { %1192 = vst [vmem:[#allocation3 + $0x50] sm:$0xff] %v1154_v31  ;;  %v1144_v33 = vadd.f32 %v1255_v29, %v1143_v51 }
 0x371   :  { %1191 = vst [vmem:[#allocation3 + $0x48] sm:$0xff] %v1149_v48 }
 0x372   :  { %1190 = vst [vmem:[#allocation3 + $0x40] sm:$0xff] %v1144_v33 }
 0x373   :  { %v1460_v34 = vpop.f32.mrb[18].mxu1 }
 0x374   :  { %v1169_v35 = vadd.f32 %v1460_v34, %v1255_v29  ;;  %v1163_v36 = vpop.f32.mrb[19].mxu1 }
 0x375   :  { %v1164_v38 = vadd.f32 %v1255_v29, %v1163_v36 }
 0x376   :  { %1195 = vst [vmem:[#allocation3 + $0x68] sm:$0xff] %v1169_v35 }
 0x377   :  { %1194 = vst [vmem:[#allocation3 + $0x60] sm:$0xff] %v1164_v38 }
 0x37a   :  { %v1463_v55 = vpop.f32.mrb[20].mxu1 }
 0x37b   :  { %v1179_v58 = vadd.f32 %v1463_v55, %v1255_v29  ;;  %v1173_v39 = vpop.f32.mrb[21].mxu1 }
 0x37c   :  { %v1174_v41 = vadd.f32 %v1255_v29, %v1173_v39 }
 0x37d   :  { %1197 = vst [vmem:[#allocation3 + $0x78] sm:$0xff] %v1179_v58 }
 0x37e   :  { %1196 = vst [vmem:[#allocation3 + $0x70] sm:$0xff] %v1174_v41 }
 0x37f   :  { %1558 = shalt.err (!%p1555_p4)
}
 0x380   :  { %s1559_s24 = scalar_lea.hbm %s2039_s9, 2048 }
 0x381   :  { %p1560_p5 = scmp.ne.s32.totalorder %s2039_s9, %s1559_s24  ;;  %p1563_p6 = scmp.lt.u32.totalorder %s1559_s24, %s2039_s9 }
 0x383   :  { %p1565_p7 = pnand %p1563_p6, %p1560_p5 }
 0x385   :  { %1568 = shalt.err (!%p1565_p7)
}
 0x386   :  { %s1574_s0 = smov 128   ;;  %s1575_s27 = smov 8  }
 0x387   :  { %1209 = dma.vmem_to_hbm [thread:$0]  %s1204_s21, 2048, %s2039_s9, [#allocation4], %s1574_s0, %s1574_s0, %s1575_s27  }
 0x388   :  { %1569 = dma.done.wait [#allocation4], 2048  }
 0x389   :  { %1570 = vsyncadd [#allocation4], 4294965248 }
 0x38a   :  { %1213 = vsyncpa [#allocation4], 1 }

</bundles_post_ra>
